<compile_context>
chip_gen: v7x
topology: tpu7x:2x2x1
jax: 0.10.0
libtpu: 0.0.40
codegen_flags: <defaults>
</compile_context>

<pallas_src>
import math

import jax
import jax.numpy as jnp
from jax import lax
from jax.experimental import pallas as pl
from jax.experimental.pallas import tpu as pltpu

_LANE = 128
_SUB = 8


def _vmem_capacity_bytes():
    """Physical VMEM per TensorCore, with conservative fallbacks."""
    try:
        return int(pltpu.get_tpu_info().vmem_capacity_bytes)
    except Exception:
        pass
    try:
        kind = jax.devices()[0].device_kind.lower()
        if "v7" in kind:
            return 64 * 2**20
        return 128 * 2**20          # v4 / v5e / v6e
    except Exception:
        return 64 * 2**20           # conservative


def _scoped_vmem_cap(vmem_cap):
    """Scoped-VMEM ceiling leaving headroom for compiler internals."""
    if vmem_cap <= 64 * 2**20:      # v7x
        return 48 * 2**20
    return 100 * 2**20              # v5e / v6e (128 MiB physical)


def _choose_s_tile(S, C, itemsize, max_block_bytes):
    """Largest multiple-of-128 spatial tile dividing S within the block budget."""
    assert S % _LANE == 0
    cap = max(_LANE, (max_block_bytes // max(1, C * itemsize)) // _LANE * _LANE)
    ts = _LANE
    cand = _LANE
    limit = min(S, cap)
    while cand <= limit:
        if S % cand == 0:
            ts = cand
        cand += _LANE
    return ts


# --------------------------------------------------------------------------
# Fused single-pass kernel: pool + conv + sigmoid + scale on a resident slab.
# --------------------------------------------------------------------------
def _make_fused_kernel(C, k, pad, halo, inv_s):
    assert halo >= pad and halo % _SUB == 0

    def kernel(taps_ref, x_ref, o_ref, col_ref):
        # taps_ref : SMEM (k,) f32 conv taps
        # x_ref    : VMEM (1, C, S) full image slab (C on sublanes, S on lanes)
        # o_ref    : VMEM (1, C, S) output slab
        # col_ref  : VMEM (C + 2*halo, 1) f32 zero-padded pooled channel column
        # Global average pool (f32-accumulated reduce over the spatial lanes).
        col_ref[...] = jnp.zeros_like(col_ref)
        col_ref[pl.ds(halo, C), :] = (
            jnp.sum(x_ref[0].astype(jnp.float32), axis=1, keepdims=True) * inv_s)
        # 1-D channel conv as k static shifted-adds over the zero-padded column
        # (k <= 9 for any realistic ECA config; pure VPU work, zero MXU).
        conv = jnp.zeros((C, 1), jnp.float32)
        for j in range(k):
            conv = conv + taps_ref[j] * col_ref[pl.ds(halo + j - pad, C), :]
        gate = 1.0 / (1.0 + jnp.exp(-conv))            # sigmoid on the EUP
        # Broadcast multiply in the native dtype; single write of the slab.
        o_ref[0] = x_ref[0] * gate.astype(o_ref.dtype)

    return kernel


# --------------------------------------------------------------------------
# Fallback pass 1: lane-dense f32 partial channel sums per (image, chunk).
# --------------------------------------------------------------------------
def _make_pool_kernel(C, ts):
    n_groups = ts // _LANE

    def kernel(x_ref, psum_ref, acc_ref):
        # x_ref    : VMEM (1, C, ts) input tile
        # psum_ref : VMEM (1, 1, C, 1) f32 partial channel sums (resident over seq axis)
        # acc_ref  : VMEM (C, 128) f32 lane-dense running sums
        s = pl.program_id(2)

        @pl.when(s == 0)
        def _init():
            acc_ref[...] = jnp.zeros_like(acc_ref)

        # VPU-only accumulation over lane groups; the single cross-lane XLU
        # reduce is deferred to the finalize below.
        def body(g, carry):
            start = pl.multiple_of(g * _LANE, _LANE)
            acc_ref[...] += x_ref[0, :, pl.ds(start, _LANE)].astype(jnp.float32)
            return carry

        lax.fori_loop(0, n_groups, body, 0)

        @pl.when(s == pl.num_programs(2) - 1)
        def _finalize():
            psum_ref[0, 0] = jnp.sum(acc_ref[...], axis=1, keepdims=True)

    return kernel


# --------------------------------------------------------------------------
# Fallback pass 2: native-dtype broadcast multiply x * gate.
# --------------------------------------------------------------------------
def _scale_kernel(gate_ref, x_ref, o_ref):
    o_ref[0] = x_ref[0] * gate_ref[0]


def eca_module(x, conv_w, *, max_block_bytes=8 * 2**20, donate_x=False,
               force_two_pass=False):
    """x: (B, C, H, W). conv_w: (1, 1, k) Conv1d weight (no bias)."""
    B, C, H, W = x.shape
    S = H * W
    k = int(conv_w.shape[-1])
    assert k % 2 == 1, "ECA Conv1d kernel size must be odd"
    pad = (k - 1) // 2

    taps = conv_w.reshape(k).astype(jnp.float32)   # (k,) -> SMEM
    x_flat = x.reshape(B, C, S)
    itemsize = jnp.dtype(x.dtype).itemsize

    vmem_cap = _vmem_capacity_bytes()
    scoped_cap = _scoped_vmem_cap(vmem_cap)

    # Double-buffered in + out slabs, plus headroom for an f32 upcast temp when
    # the input is a narrow dtype.
    block_bytes = C * S * itemsize
    f32_extra = 0 if itemsize >= 4 else C * S * 4
    fused_need = 4 * block_bytes + f32_extra + (2 << 20)
    # Ragged spatial maps (S % 128 != 0, e.g. 7x7/14x14/28x28) always take the
    # fused full-extent path: those stages are tiny in absolute bytes.
    # TODO(synk): masked ragged tiling (or a channels-last lane-dense layout)
    # for the pathological "ragged AND too large to hold resident" case.
    use_fused = ((not force_two_pass) and fused_need <= scoped_cap) or (S % _LANE != 0)

    if use_fused:
        halo = max(_SUB, -(-pad // _SUB) * _SUB)   # sublane-aligned zero halo >= pad
        kernel = _make_fused_kernel(C, k, pad, halo, 1.0 / S)
        vmem_bytes = int(min(scoped_cap, max(16 * 2**20, fused_need)))
        out_flat = pl.pallas_call(
            kernel,
            out_shape=jax.ShapeDtypeStruct((B, C, S), x.dtype),
            grid_spec=pltpu.PrefetchScalarGridSpec(
                num_scalar_prefetch=0,
                grid=(B,),
                in_specs=[
                    pl.BlockSpec(memory_space=pltpu.MemorySpace.SMEM),   # taps
                    pl.BlockSpec((1, C, S), lambda b: (b, 0, 0)),        # x slab
                ],
                out_specs=pl.BlockSpec((1, C, S), lambda b: (b, 0, 0)),
                scratch_shapes=[pltpu.VMEM((C + 2 * halo, 1), jnp.float32)],
            ),
            compiler_params=pltpu.CompilerParams(
                dimension_semantics=("parallel",),
                vmem_limit_bytes=vmem_bytes),
            input_output_aliases=({1: 0} if donate_x else {}),
        )(taps, x_flat)
        return out_flat.reshape(B, C, H, W)

    # ------------------ two-pass fallback (slab too large) ------------------
    ts = _choose_s_tile(S, C, itemsize, max_block_bytes)
    n_s = S // ts
    # Split the sequential spatial reduction into two parallel chunks so both
    # v7x TensorCores stream HBM even at batch 1 (no-op cost elsewhere).
    n_par = 2 if (n_s % 2 == 0 and n_s >= 2) else 1
    n_seq = n_s // n_par

    tile_bytes = C * ts * itemsize
    vmem_bytes = int(min(scoped_cap, max(16 * 2**20, 6 * tile_bytes + (2 << 20))))

    psums = pl.pallas_call(
        _make_pool_kernel(C, ts),
        out_shape=jax.ShapeDtypeStruct((B, n_par, C, 1), jnp.float32),
        grid_spec=pltpu.PrefetchScalarGridSpec(
            num_scalar_prefetch=0,
            grid=(B, n_par, n_seq),
            in_specs=[pl.BlockSpec((1, C, ts),
                                   lambda b, o, i: (b, 0, o * n_seq + i))],
            out_specs=pl.BlockSpec((1, 1, C, 1), lambda b, o, i: (b, o, 0, 0)),
            scratch_shapes=[pltpu.VMEM((C, _LANE), jnp.float32)],
        ),
        compiler_params=pltpu.CompilerParams(
            dimension_semantics=("parallel", "parallel", "arbitrary"),
            vmem_limit_bytes=vmem_bytes),
    )(x_flat)

    # Tiny epilogue (a few KB of data): combine chunk sums, k-tap conv, sigmoid.
    pooled = jnp.sum(psums[..., 0], axis=1) * (1.0 / S)          # (B, C) f32 mean
    padded = jnp.pad(pooled, ((0, 0), (pad, pad)))
    conv = sum(taps[j] * padded[:, j:j + C] for j in range(k))
    gate = jax.nn.sigmoid(conv).astype(x.dtype)[:, :, None]      # (B, C, 1)

    out_flat = pl.pallas_call(
        _scale_kernel,
        out_shape=jax.ShapeDtypeStruct((B, C, S), x.dtype),
        grid_spec=pltpu.PrefetchScalarGridSpec(
            num_scalar_prefetch=0,
            grid=(B, n_s),
            in_specs=[
                pl.BlockSpec((1, C, 1), lambda b, s: (b, 0, 0)),   # gate
                pl.BlockSpec((1, C, ts), lambda b, s: (b, 0, s)),  # x tile
            ],
            out_specs=pl.BlockSpec((1, C, ts), lambda b, s: (b, 0, s)),
        ),
        compiler_params=pltpu.CompilerParams(
            dimension_semantics=("parallel", "parallel"),
            vmem_limit_bytes=vmem_bytes),
        input_output_aliases=({1: 0} if donate_x else {}),
    )(gate, x_flat)

    return out_flat.reshape(B, C, H, W)


def _eca_reference(x, conv_w):
    """Pure-JAX reference mirroring the PyTorch forward."""
    k = conv_w.shape[-1]
    pad = (k - 1) // 2
    pooled = jnp.mean(x.astype(jnp.float32), axis=(2, 3))            # (B, C)
    padded = jnp.pad(pooled, ((0, 0), (pad, pad)))
    taps = conv_w.reshape(k).astype(jnp.float32)
    conv = sum(taps[j] * padded[:, j:j + pooled.shape[1]] for j in range(k))
    gate = jax.nn.sigmoid(conv)[:, :, None, None]
    return (x.astype(jnp.float32) * gate).astype(x.dtype)


def _eca_kernel_size(channels, gamma=2, b=1):
    k = int(abs((math.log(channels, 2) + b) / gamma))
    return k if k % 2 else k + 1


if __name__ == "__main__":
    key = jax.random.PRNGKey(0)
    k0, k1, k2, k3 = jax.random.split(key, 4)

    # --- Test 1: fused single-pass path (default), lane-aligned S -----------
    B, C, H, W = 2, 64, 16, 16
    k = _eca_kernel_size(C)                       # C=64 -> k=3
    x = jax.random.normal(k0, (B, C, H, W), dtype=jnp.float32)
    bound = 1.0 / math.sqrt(k)
    conv_w = jax.random.uniform(k1, (1, 1, k), jnp.float32, -bound, bound)

    ref = _eca_reference(x, conv_w)
    out = jax.block_until_ready(eca_module(x, conv_w))
    assert out.shape == x.shape and out.dtype == x.dtype
    assert jnp.allclose(out, ref, atol=1e-5, rtol=1e-5)

    # --- Test 2: forced two-pass fallback (tiled spatial accumulation) ------
    out2 = jax.block_until_ready(
        eca_module(x, conv_w, max_block_bytes=32 * 1024, force_two_pass=True))
    assert jnp.allclose(out2, ref, atol=1e-5, rtol=1e-5)

    # --- Test 3: ragged spatial map (7x7) -> fused full-extent block --------
    C3 = 128
    k3_size = _eca_kernel_size(C3)                # C=128 -> k=5
    x3 = jax.random.normal(k2, (2, C3, 7, 7), dtype=jnp.float32)
    conv_w3 = jax.random.uniform(k3, (1, 1, k3_size), jnp.float32,
                                 -1.0 / math.sqrt(k3_size), 1.0 / math.sqrt(k3_size))
    out3 = jax.block_until_ready(eca_module(x3, conv_w3))
    assert jnp.allclose(out3, _eca_reference(x3, conv_w3), atol=1e-5, rtol=1e-5)

    print("KERNEL_OK")
</pallas_src>

<mosaic_0001>
module attributes {stable_mosaic.version = 11 : i64} {
  func.func @kernel(%arg0: i32, %arg1: memref<3xf32, #tpu.memory_space<smem>>, %arg2: memref<1x64x256xf32, #tpu.memory_space<vmem>>, %arg3: memref<1x64x256xf32, #tpu.memory_space<vmem>>, %arg4: memref<80x1xf32, #tpu.memory_space<vmem>>) attributes {dimension_semantics = [#tpu.dimension_semantics<parallel>], iteration_bounds = array<i64: 2>, scalar_prefetch = 0 : i64, scratch_operands = 1 : i64, tpu.core_type = #tpu.core_type<tc>, window_params = [{transform_indices = @transform_0, window_bounds = array<i64: 3>}, {transform_indices = @transform_1, window_bounds = array<i64: 1, 64, 256>}, {transform_indices = @transform_2, window_bounds = array<i64: 1, 64, 256>}]} {
    %cst = arith.constant 0.000000e+00 : f32
    %0 = vector.broadcast %cst : f32 to vector<80x1xf32>
    %c0 = arith.constant 0 : index
    %c0_0 = arith.constant 0 : index
    %1 = vector.load %arg4[%c0, %c0_0] : memref<80x1xf32, #tpu.memory_space<vmem>>, vector<80x1xf32>
    tpu.vector_store %arg4[%c0, %c0_0], %0 {strides = array<i32>} : memref<80x1xf32, #tpu.memory_space<vmem>>, vector<80x1xf32>,
    %c0_1 = arith.constant 0 : index
    %c0_2 = arith.constant 0 : index
    %c0_3 = arith.constant 0 : index
    %2 = vector.load %arg2[%c0_1, %c0_2, %c0_3] : memref<1x64x256xf32, #tpu.memory_space<vmem>>, vector<1x64x256xf32>
    %3 = vector.shape_cast %2 : vector<1x64x256xf32> to vector<64x256xf32>
    %cst_4 = arith.constant dense<0.000000e+00> : vector<64xf32>
    %4 = vector.multi_reduction <add>, %3, %cst_4 [1] : vector<64x256xf32> to vector<64xf32>
    %5 = vector.shape_cast %4 : vector<64xf32> to vector<64x1xf32>
    %cst_5 = arith.constant 3.906250e-03 : f32
    %6 = vector.broadcast %cst_5 : f32 to vector<64x1xf32>
    %7 = arith.mulf %5, %6 : vector<64x1xf32>
    %c8 = arith.constant 8 : index
    %c0_6 = arith.constant 0 : index
    %8 = vector.load %arg4[%c8, %c0_6] : memref<80x1xf32, #tpu.memory_space<vmem>>, vector<64x1xf32>
    tpu.vector_store %arg4[%c8, %c0_6], %7 {strides = array<i32>} : memref<80x1xf32, #tpu.memory_space<vmem>>, vector<64x1xf32>,
    %cst_7 = arith.constant 0.000000e+00 : f32
    %9 = vector.broadcast %cst_7 : f32 to vector<64x1xf32>
    %c0_8 = arith.constant 0 : index
    %10 = memref.load %arg1[%c0_8] : memref<3xf32, #tpu.memory_space<smem>>
    %c7 = arith.constant 7 : index
    %c0_9 = arith.constant 0 : index
    %11 = vector.load %arg4[%c7, %c0_9] : memref<80x1xf32, #tpu.memory_space<vmem>>, vector<64x1xf32>
    %12 = vector.broadcast %10 : f32 to vector<64x1xf32>
    %13 = arith.mulf %12, %11 : vector<64x1xf32>
    %14 = arith.addf %9, %13 : vector<64x1xf32>
    %c1 = arith.constant 1 : index
    %15 = memref.load %arg1[%c1] : memref<3xf32, #tpu.memory_space<smem>>
    %c8_10 = arith.constant 8 : index
    %c0_11 = arith.constant 0 : index
    %16 = vector.load %arg4[%c8_10, %c0_11] : memref<80x1xf32, #tpu.memory_space<vmem>>, vector<64x1xf32>
    %17 = vector.broadcast %15 : f32 to vector<64x1xf32>
    %18 = arith.mulf %17, %16 : vector<64x1xf32>
    %19 = arith.addf %14, %18 : vector<64x1xf32>
    %c2 = arith.constant 2 : index
    %20 = memref.load %arg1[%c2] : memref<3xf32, #tpu.memory_space<smem>>
    %c9 = arith.constant 9 : index
    %c0_12 = arith.constant 0 : index
    %21 = vector.load %arg4[%c9, %c0_12] : memref<80x1xf32, #tpu.memory_space<vmem>>, vector<64x1xf32>
    %22 = vector.broadcast %20 : f32 to vector<64x1xf32>
    %23 = arith.mulf %22, %21 : vector<64x1xf32>
    %24 = arith.addf %19, %23 : vector<64x1xf32>
    %cst_13 = arith.constant 0.000000e+00 : f32
    %25 = vector.broadcast %cst_13 : f32 to vector<64x1xf32>
    %26 = arith.subf %25, %24 : vector<64x1xf32>
    %27 = math.exp %26 : vector<64x1xf32>
    %cst_14 = arith.constant 1.000000e+00 : f32
    %28 = vector.broadcast %cst_14 : f32 to vector<64x1xf32>
    %29 = arith.addf %28, %27 : vector<64x1xf32>
    %cst_15 = arith.constant 1.000000e+00 : f32
    %30 = vector.broadcast %cst_15 : f32 to vector<64x1xf32>
    %31 = arith.divf %30, %29 : vector<64x1xf32>
    %c0_16 = arith.constant 0 : index
    %c0_17 = arith.constant 0 : index
    %c0_18 = arith.constant 0 : index
    %32 = vector.load %arg2[%c0_16, %c0_17, %c0_18] : memref<1x64x256xf32, #tpu.memory_space<vmem>>, vector<1x64x256xf32>
    %33 = vector.shape_cast %32 : vector<1x64x256xf32> to vector<64x256xf32>
    %34 = vector.broadcast %31 : vector<64x1xf32> to vector<64x256xf32>
    %35 = arith.mulf %33, %34 : vector<64x256xf32>
    %c0_19 = arith.constant 0 : index
    %c0_20 = arith.constant 0 : index
    %c0_21 = arith.constant 0 : index
    %36 = vector.load %arg3[%c0_19, %c0_20, %c0_21] : memref<1x64x256xf32, #tpu.memory_space<vmem>>, vector<1x64x256xf32>
    %37 = vector.shape_cast %36 : vector<1x64x256xf32> to vector<64x256xf32>
    %38 = vector.shape_cast %35 : vector<64x256xf32> to vector<1x64x256xf32>
    tpu.vector_store %arg3[%c0_19, %c0_20, %c0_21], %38 {strides = array<i32>} : memref<1x64x256xf32, #tpu.memory_space<vmem>>, vector<1x64x256xf32>,
    return
  }
  func.func @transform_0(%arg0: i32) -> i32 {
    %c0_i32 = arith.constant 0 : i32
    %c0_i32_0 = arith.constant 0 : i32
    return %c0_i32 : i32
  }
  func.func @transform_1(%arg0: i32) -> (i32, i32, i32) {
    %c0_i32 = arith.constant 0 : i32
    %c0_i32_0 = arith.constant 0 : i32
    %c0_i32_1 = arith.constant 0 : i32
    return %arg0, %c0_i32, %c0_i32_0 : i32, i32, i32
  }
  func.func @transform_2(%arg0: i32) -> (i32, i32, i32) {
    %c0_i32 = arith.constant 0 : i32
    %c0_i32_0 = arith.constant 0 : i32
    %c0_i32_1 = arith.constant 0 : i32
    return %arg0, %c0_i32, %c0_i32_0 : i32, i32, i32
  }
}

</mosaic_0001>

<bundles_post_ra>
// kernel: tpu_custom_call.1
= control target key start
LH: loop header
LB: loop body
LE: loop exit
PB: predicated region body
PF: predicated region fallthrough
CT: control target
= control target key end

     0   :  { %7 = vsyncpa [#allocation6], 0  ;;  %s1135_s0 = inlined_call_operand.hbm [shape: f32[3], index: 0, kind: input, shape index: {}]   ;;  %s1136_s1 = inlined_call_operand.hbm [shape: f32[2,64,256], index: 1, kind: input, shape index: {}]   ;;  %s1137_s2 = inlined_call_operand.hbm [shape: f32[2,64,256], index: 2, kind: output, shape index: {}]  }
   0x1   :  { %8 = vsyncpa [#allocation4], 0 }
   0x2   :  { %10 = vsyncpa [#allocation4 + $0x1], 0 }
   0x3   :  { %11 = vsyncpa [#allocation5], 0 }
   0x4   :  { %13 = vsyncpa [#allocation5 + $0x1], 0  ;;  %s810_s9 = smov 0   ;;  %s812_s10 = smov 0  }
   0x5   :  { %s814_s11 = smov 0   ;;  %s816_s12 = smov 0  }
   0x6 LB: > { %s831_s13 = sadd.s32 4294967295, %s784_s12   ;;  %s554_s14 = sadd.s32 4294967294, %s784_s12   ;;  %s784_s12 = sphi %s816_s12, %s1157_s12   ;;  %s780_s11 = sphi %s814_s11, %s1156_s11   ;;  %s776_s10 = sphi %s812_s10, %s1155_s10   ;;  %s772_s9 = sphi %s810_s9, %s1154_s9  }
   0x7   : > { %s835_s15 = sadd.s32 1, %s784_s12   ;;  %s47_s16 = sadd.s32 1, %s780_s11 }
   0x8   : > { %s44_s17 = ssub.s32 %s784_s12, %s835_s15  ;;  %p54_p0 = scmp.ne.s32.totalorder %s780_s11, %s776_s10 }
   0x9   : > { %p45_p1 = scmp.eq.s32.totalorder %s44_s17, 0  ;;  %p55_p2 = scmp.eq.s32.totalorder %s784_s12, 0 }
   0xa   : > { %p60_p3 = scmp.ne.s32.totalorder %s776_s10, %s772_s9  ;;  %p1138_p4 = scmp.eq.s32.totalorder %s831_s13, 0 }
   0xb   : > { %s847_s18 = scalar_select %p45_p1, %s780_s11, %s47_s16  }
   0xc   : > { %p849_p5 = por %p55_p2, %p54_p0  ;;  %p855_p6 = por %p1138_p4, %p60_p3 }
   0xd   : > { %p84_p7 = scmp.eq.s32.totalorder %s831_s13, 1  ;;  %p90_p8 = scmp.eq.s32.totalorder %s554_s14, 1 }
   0xe   : > { %s1142_s20 = scalar_select %p855_p6, 1, 0 }
   0xf   : > { %p555_p9 = scmp.ge.s32.totalorder %s784_s12, 1  ;;  %p97_p10 = scmp.lt.s32.totalorder %s784_s12, 3 }
  0x10   : > { %p862_p11 = por %p84_p7, %p54_p0  ;;  %p866_p12 = por %p90_p8, %p60_p3 }
  0x11   : > { %p870_p13 = pnand %p555_p9, %p97_p10  ;;  %p595_p4 = scmp.lt.s32.totalorder %s784_s12, 2 }
  0x12   : > { %s1143_s21 = scalar_select %p862_p11, 1, 0 }
  0x13   : > { %s1144_s22 = scalar_select %p866_p12, 1, 0 }
  0x14   : > { %p582_p2 = pneg %p870_p13  ;;  %s119_s24 = sand.u32 1, %s780_s11  }
  0x15   : > { %s572_s25 = sshll.u32 %s784_s12, 11  ;;  %p1146_p6 = scmp.eq.s32.totalorder %s831_s13, 0 }
  0x16   : > { %p884_p7 = pnand %p595_p4, %p849_p5  ;;  %s558_s27 = sshll.u32 %s119_s24, 7 }
  0x17   : > { %p583_p0 = pnand %p582_p2, %p1146_p6  ;;  %s671_s30 = scalar_lea.hbm %s1135_s0, 16 }
  0x18   : > { %p672_p3 = scmp.ne.s32.totalorder %s1135_s0, %s671_s30  ;;  %p678_p6 = scmp.lt.u32.totalorder %s671_s30, %s1135_s0 }
  0x19   : > { %p673_p8 = pneg %p583_p0 }
  0x1b   : > { %p674_p9 = pnand %p673_p8, %p672_p3 }
  0x1d   : > { %p675_p10 = pneg %p674_p9 }
  0x1f   : > { %p680_p4 = pnand %p678_p6, %p675_p10 }
  0x21   : > { %683 = shalt.err (!%p680_p4)
}
  0x22   : > { %s786_s7 = smov [#allocation3]   ;;  %s903_s19 = scalar_lea.hbm %s1136_s1, %s572_s25 }
  0x23   : > { %585 = dma.hbm_to_smem (!%p583_p0), %s1135_s0, 16, %s786_s7, [#allocation6]  }
  0x24   : > { %s123_s28 = scalar_lea.vmem [#allocation7], %s558_s27  ;;  %s907_s30 = scalar_lea.sflag [#allocation4], %s119_s24 }
  0x25   : > { %s130_s29 = sshll.u32 %s123_s28, 4  ;;  %s684_s3 = scalar_lea.hbm %s903_s19, 2048  ;;  %s905_s29 = int_to_ptr.vmem [resolvable:$true] %s130_s29 }
  0x26   : > { %p685_p5 = scmp.ne.s32.totalorder %s903_s19, %s684_s3  ;;  %p686_p2 = pneg %p884_p7 }
  0x27   : > { %s689_s5 = scalar_lea.hbm %s1136_s1, 4096  ;;  %p690_p8 = scmp.lt.u32.totalorder %s903_s19, %s1136_s1 }
  0x28   : > { %p687_p0 = pnand %p686_p2, %p685_p5  ;;  %p691_p9 = scmp.lt.u32.totalorder %s689_s5, %s684_s3 }
  0x29   : > { %p693_p6 = scmp.lt.u32.totalorder %s684_s3, %s903_s19 }
  0x2a   : > { %p688_p3 = pneg %p687_p0  ;;  %p692_p10 = por %p691_p9, %p690_p8 }
  0x2c   : > { %p694_p4 = por %p693_p6, %p692_p10 }
  0x2e   : > { %p695_p1 = pnand %p694_p4, %p688_p3 }
  0x30   : > { %698 = shalt.err (!%p695_p1)
}
  0x31   : > { %s699_s24 = scalar_lea.vmem %s905_s29, 2048  ;;  %s787_s27 = smov [#allocation7]  }
  0x32   : > { %p700_p5 = scmp.ne.s32.totalorder %s905_s29, %s699_s24  ;;  %s704_s8 = sshll.u32 %s787_s27, 4  ;;  %s705_s8 = int_to_ptr.vmem [resolvable:$false] %s704_s8 }
  0x33   : > { %s706_s14 = scalar_lea.vmem %s705_s8, 4096  ;;  %p707_p11 = scmp.lt.s32.totalorder %s905_s29, %s705_s8 }
  0x34   : > { %p702_p0 = pnand %p700_p5, %p686_p2  ;;  %p708_p8 = scmp.lt.s32.totalorder %s706_s14, %s699_s24 }
  0x36   : > { %p703_p12 = pneg %p702_p0  ;;  %p709_p9 = por %p708_p8, %p707_p11 }
  0x38   : > { %p710_p10 = pnand %p709_p9, %p703_p12 }
  0x3a   : > { %713 = shalt.err (!%p710_p10)
}
  0x3b   : > { %s788_s16 = smov 256   ;;  %s789_s17 = smov 16  }
  0x3c   : > { %589 = dma.hbm_to_vmem [thread:$0]  (!%p884_p7), %s903_s19, 2048, %s905_s29, %s907_s30, %s788_s16, %s788_s16, %s789_s17  }
  0x3d   : > { %142 = sbr.rel (%p870_p13) target bundleno = 439 (0x1b7), region = 28  ;;  %p1148_p1 = scmp.eq.s32.totalorder (!%p870_p13), %s831_s13, 0 }
  0x44   : > { %759 = dma.done.wait (%p1148_p1), [#allocation6], 16   ;;  %p1149_p2 = pmov %p1148_p1 }
  0x45   : > { %s942_s28 = sand.u32 1, %s776_s10   ;;  %p1150_p11 = scmp.ne.s32.totalorder %s1142_s20, 0 }
  0x46   : > { %761 = vsyncadd (%p1149_p2), [#allocation6], 4294967280  ;;  %s563_s3 = sshll.u32 %s942_s28, 7  ;;  %s149_s25 = scalar_lea.sflag [#allocation4], %s942_s28 }
  0x47   : > { %s152_s26 = scalar_lea.vmem [#allocation7], %s563_s3 }
  0x48   : > { %763 = dma.done.wait (%p1150_p11), %s149_s25, 2048  }
  0x49   : > { %765 = vsyncadd (%p1150_p11), %s149_s25, 4294965248 }
  0x4a   : > { %157 = sfence }
  0x4b   : > { %v952_v0 = vld [vmem:[%s152_s26] sm:$0xff]  ;;  %v954_v1 = vld [vmem:[%s152_s26 + $0x8] sm:$0xff]  ;;  %v962_v5 = vld [vmem:[%s152_s26 + $0x10] sm:$0xff]  ;;  %vm174_vm0 = vcmask 7168   ;;  %v790_v24 = vmov 0.0   ;;  %v791_v25 = vmov 0  }
  0x4c   : > { %v956_v2 = vld [vmem:[%s152_s26 + $0x20] sm:$0xff]  ;;  %v201_v3 = vadd.f32 %v954_v1, %v952_v0  ;;  %v960_v4 = vld [vmem:[%s152_s26 + $0x28] sm:$0xff]  ;;  %v964_v6 = vld [vmem:[%s152_s26 + $0x18] sm:$0xff]  ;;  %175 = vst.msk [vmem:[#allocation2] sm:$0xff] %vm174_vm0, %v790_v24  ;;  %637 = vset.pattern.permute.xlu0 %v791_v25  ;;  %638 = vset.pattern.permute.xlu1 %v791_v25  ;;  %s241_s20 = sld [smem:[#allocation3]]  ;;  %s565_s23 = sld [smem:[#allocation3 + $0x1]] }
  0x4d   : > { %v207_v7 = vadd.f32 %v960_v4, %v956_v2  ;;  %v968_v8 = vld [vmem:[%s152_s26 + $0x30] sm:$0xff]  ;;  %v970_v9 = vld [vmem:[%s152_s26 + $0x38] sm:$0xff]  ;;  %v204_v10 = vadd.f32 %v964_v6, %v962_v5  ;;  %v976_v12 = vld [vmem:[%s152_s26 + $0x40] sm:$0xff]  ;;  %176 = vst.msk [vmem:[#allocation2 + $0x8] sm:$0xff] %vm174_vm0, %v790_v24  ;;  %s566_s19 = sld [smem:[#allocation3 + $0x2]]  ;;  %s1052_s29 = scalar_lea.vmem [#allocation8], %s563_s3 }
  0x4e   : > { %202 = vadd.xlane.f32.xlu0 %v201_v3  ;;  %v210_v11 = vadd.f32 %v970_v9, %v968_v8  ;;  %v978_v13 = vld [vmem:[%s152_s26 + $0x48] sm:$0xff]  ;;  %v980_v14 = vld [vmem:[%s152_s26 + $0x50] sm:$0xff]  ;;  %v982_v15 = vld [vmem:[%s152_s26 + $0x58] sm:$0xff]  ;;  %184 = vst.msk [vmem:[#allocation2 + $0x48] sm:$0xff] %vm174_vm0, %v790_v24  ;;  %s573_s30 = sshll.u32 %s831_s13, 11  ;;  %s469_s4 = sshll.u32 %s1052_s29, 4  ;;  %s1087_s4 = int_to_ptr.vmem [resolvable:$true] %s469_s4 }
  0x4f   : > { %208 = vadd.xlane.f32.xlu1 %v207_v7  ;;  %v213_v16 = vadd.f32 %v978_v13, %v976_v12  ;;  %v216_v17 = vadd.f32 %v982_v15, %v980_v14  ;;  %v988_v18 = vld [vmem:[%s152_s26 + $0x60] sm:$0xff]  ;;  %v990_v19 = vld [vmem:[%s152_s26 + $0x68] sm:$0xff]  ;;  %v992_v20 = vld [vmem:[%s152_s26 + $0x70] sm:$0xff]  ;;  %177 = vst.msk [vmem:[#allocation2 + $0x10] sm:$0xff] %vm174_vm0, %v790_v24  ;;  %s1085_s7 = scalar_lea.hbm %s1137_s2, %s573_s30  ;;  %s456_s13 = scalar_lea.sflag [#allocation5], %s942_s28 }
  0x50   : > { %v994_v21 = vld [vmem:[%s152_s26 + $0x78] sm:$0xff]  ;;  %v219_v22 = vadd.f32 %v990_v19, %v988_v18  ;;  %178 = vst.msk [vmem:[#allocation2 + $0x18] sm:$0xff] %vm174_vm0, %v790_v24  ;;  %179 = vst.msk [vmem:[#allocation2 + $0x20] sm:$0xff] %vm174_vm0, %v790_v24  ;;  %s714_s24 = scalar_lea.vmem %s1087_s4, 2048  ;;  %p1151_p13 = scmp.ne.s32.totalorder %s1143_s21, 0 }
  0x51   : > { %v222_v23 = vadd.f32 %v994_v21, %v992_v20  ;;  %180 = vst.msk [vmem:[#allocation2 + $0x28] sm:$0xff] %vm174_vm0, %v790_v24  ;;  %181 = vst.msk [vmem:[#allocation2 + $0x30] sm:$0xff] %vm174_vm0, %v790_v24  ;;  %p715_p12 = scmp.ne.s32.totalorder %s1087_s4, %s714_s24  ;;  %s792_s27 = smov [#allocation8]  }
  0x52   : > { %205 = vadd.xlane.f32.xlu0 %v204_v10  ;;  %182 = vst.msk [vmem:[#allocation2 + $0x38] sm:$0xff] %vm174_vm0, %v790_v24  ;;  %183 = vst.msk [vmem:[#allocation2 + $0x40] sm:$0xff] %vm174_vm0, %v790_v24  ;;  %v1014_v35 = vstv %s241_s20  ;;  %v1016_v36 = vstv %s565_s23  ;;  %s718_s8 = sshll.u32 %s792_s27, 4  ;;  %s719_s8 = int_to_ptr.vmem [resolvable:$false] %s718_s8 }
  0x53   : > { %211 = vadd.xlane.f32.xlu1 %v210_v11  ;;  %v1022_v46 = vstv %s566_s19  ;;  %p716_p7 = pnand %p715_p12, %p1151_p13  ;;  %s720_s14 = scalar_lea.vmem %s719_s8, 4096 }
  0x54   : > { %p721_p6 = scmp.lt.s32.totalorder %s1087_s4, %s719_s8  ;;  %p722_p4 = scmp.lt.s32.totalorder %s720_s14, %s714_s24 }
  0x55   : > { %p717_p3 = pneg %p716_p7 }
  0x56   : > { %214 = vadd.xlane.f32.xlu0 %v213_v16  ;;  %p723_p5 = por %p722_p4, %p721_p6 }
  0x57   : > { %217 = vadd.xlane.f32.xlu1 %v216_v17 }
  0x58   : > { %p724_p0 = pnand %p723_p5, %p717_p3 }
  0x5a   : > { %220 = vadd.xlane.f32.xlu0 %v219_v22 }
  0x5b   : > { %223 = vadd.xlane.f32.xlu1 %v222_v23 }
  0xdb   : > { %v203_v26 = vpop.xlane.xlu0 %202 }
  0xdc   : > { %v225_v27 = vmul.f32 0.00390625, %v203_v26  ;;  %v209_v28 = vpop.xlane.xlu1 %208 }
  0xdd   : > { %v227_v29 = vmul.f32 0.00390625, %v209_v28 }
  0xde   : > { %233 = vst.msk [vmem:[#allocation2 + $0x8] sm:$0xff] %vm174_vm0, %v225_v27 }
  0xdf   : > { %235 = vst.msk [vmem:[#allocation2 + $0x18] sm:$0xff] %vm174_vm0, %v227_v29  ;;  %v206_v30 = vpop.xlane.xlu0 %205 }
  0xe0   : > { %v226_v31 = vmul.f32 0.00390625, %v206_v30  ;;  %v212_v32 = vpop.xlane.xlu1 %211 }
  0xe1   : > { %v228_v33 = vmul.f32 0.00390625, %v212_v32 }
  0xe2   : > { %234 = vst.msk [vmem:[#allocation2 + $0x10] sm:$0xff] %vm174_vm0, %v226_v31 }
  0xe3   : > { %236 = vst.msk [vmem:[#allocation2 + $0x20] sm:$0xff] %vm174_vm0, %v228_v33  ;;  %v215_v34 = vpop.xlane.xlu0 %214 }
  0xe4   : > { %v229_v37 = vmul.f32 0.00390625, %v215_v34  ;;  %v218_v38 = vpop.xlane.xlu1 %217 }
  0xe5   : > { %v230_v39 = vmul.f32 0.00390625, %v218_v38  ;;  %v242_v40 = vld [vmem:[#allocation2 + $0x7] sm:$0xff] }
  0xe6   : > { %v268_v41 = vld [vmem:[#allocation2 + $0x8] sm:$0xff]  ;;  %237 = vst.msk [vmem:[#allocation2 + $0x28] sm:$0xff] %vm174_vm0, %v229_v37  ;;  %v251_v42 = vmul.f32 %v1014_v35, %v242_v40  ;;  %v270_v44 = vld [vmem:[#allocation2 + $0x18] sm:$0xff] }
  0xe7   : > { %v277_v43 = vmul.f32 %v1016_v36, %v268_v41  ;;  %238 = vst.msk [vmem:[#allocation2 + $0x30] sm:$0xff] %vm174_vm0, %v230_v39  ;;  %v221_v45 = vpop.xlane.xlu0 %220  ;;  %v279_v53 = vmul.f32 %v1016_v36, %v270_v44 }
  0xe8   : > { %v231_v47 = vmul.f32 0.00390625, %v221_v45  ;;  %v224_v48 = vpop.xlane.xlu1 %223 }
  0xe9   : > { %v232_v49 = vmul.f32 0.00390625, %v224_v48  ;;  %v294_v50 = vld [vmem:[#allocation2 + $0x9] sm:$0xff]  ;;  %v285_v54 = vadd.f32 %v277_v43, %v251_v42  ;;  %v295_v58 = vld [vmem:[#allocation2 + $0x11] sm:$0xff] }
  0xea   : > { %v243_v51 = vld [vmem:[#allocation2 + $0xf] sm:$0xff]  ;;  %239 = vst.msk [vmem:[#allocation2 + $0x38] sm:$0xff] %vm174_vm0, %v231_v47  ;;  %v303_v55 = vmul.f32 %v1022_v46, %v294_v50  ;;  %v244_v59 = vld [vmem:[#allocation2 + $0x17] sm:$0xff]  ;;  %v304_v61 = vmul.f32 %v1022_v46, %v295_v58  ;;  %v245_v3 = vld [vmem:[#allocation2 + $0x1f] sm:$0xff] }
  0xeb   : > { %v269_v52 = vld [vmem:[#allocation2 + $0x10] sm:$0xff]  ;;  %v252_v56 = vmul.f32 %v1014_v35, %v243_v51  ;;  %v296_v60 = vld [vmem:[#allocation2 + $0x19] sm:$0xff]  ;;  %240 = vst.msk [vmem:[#allocation2 + $0x40] sm:$0xff] %vm174_vm0, %v232_v49  ;;  %v253_v62 = vmul.f32 %v1014_v35, %v244_v59  ;;  %v254_v16 = vmul.f32 %v1014_v35, %v245_v3 }
  0xec   : > { %v278_v57 = vmul.f32 %v1016_v36, %v269_v52  ;;  %v305_v63 = vmul.f32 %v1022_v46, %v296_v60  ;;  %v271_v7 = vld [vmem:[#allocation2 + $0x20] sm:$0xff]  ;;  %v311_v10 = vadd.f32 %v303_v55, %v285_v54 }
  0xed   : > { %v280_v17 = vmul.f32 %v1016_v36, %v271_v7  ;;  %v287_v22 = vadd.f32 %v279_v53, %v253_v62  ;;  %v297_v23 = vld [vmem:[#allocation2 + $0x21] sm:$0xff] }
  0xee   : > { %v286_v11 = vadd.f32 %v278_v57, %v252_v56  ;;  %v246_v24 = vld [vmem:[#allocation2 + $0x27] sm:$0xff]  ;;  %v319_v26 = vsub.f32 0.0, %v311_v10  ;;  %v306_v29 = vmul.f32 %v1022_v46, %v297_v23  ;;  %v247_v31 = vld [vmem:[#allocation2 + $0x2f] sm:$0xff] }
  0xef   : > { %v272_v25 = vld [vmem:[#allocation2 + $0x28] sm:$0xff]  ;;  %v288_v28 = vadd.f32 %v280_v17, %v254_v16  ;;  %v273_v32 = vld [vmem:[#allocation2 + $0x30] sm:$0xff]  ;;  %v313_v33 = vadd.f32 %v305_v63, %v287_v22  ;;  %v255_v34 = vmul.f32 %v1014_v35, %v246_v24  ;;  %v256_v42 = vmul.f32 %v1014_v35, %v247_v31 }
  0xf0   : > { %v312_v27 = vadd.f32 %v304_v61, %v286_v11  ;;  %v298_v30 = vld [vmem:[#allocation2 + $0x29] sm:$0xff]  ;;  %v281_v37 = vmul.f32 %v1016_v36, %v272_v25  ;;  %v327_v39 = vmul.f32 1.442695, %v319_v26  ;;  %v282_v45 = vmul.f32 %v1016_v36, %v273_v32 }
  0xf1   : > { %v307_v38 = vmul.f32 %v1022_v46, %v298_v30  ;;  %v314_v41 = vadd.f32 %v306_v29, %v288_v28  ;;  %v321_v43 = vsub.f32 0.0, %v313_v33  ;;  %v299_v47 = vld [vmem:[#allocation2 + $0x31] sm:$0xff] }
  0xf2   : > { %v320_v40 = vsub.f32 0.0, %v312_v27  ;;  %v289_v44 = vadd.f32 %v281_v37, %v255_v34  ;;  %v248_v48 = vld [vmem:[#allocation2 + $0x37] sm:$0xff]  ;;  %639 = vpow2.f32 %v327_v39  ;;  %v308_v52 = vmul.f32 %v1022_v46, %v299_v47  ;;  %v249_v54 = vld [vmem:[#allocation2 + $0x3f] sm:$0xff] }
  0xf3   : > { %v274_v49 = vld [vmem:[#allocation2 + $0x38] sm:$0xff]  ;;  %v322_v51 = vsub.f32 0.0, %v314_v41  ;;  %v331_v55 = vmul.f32 1.442695, %v321_v43  ;;  %v290_v57 = vadd.f32 %v282_v45, %v256_v42  ;;  %v257_v58 = vmul.f32 %v1014_v35, %v248_v48  ;;  %v275_v59 = vld [vmem:[#allocation2 + $0x40] sm:$0xff] }
  0xf4   : > { %v329_v50 = vmul.f32 1.442695, %v320_v40  ;;  %v300_v53 = vld [vmem:[#allocation2 + $0x39] sm:$0xff]  ;;  %v315_v56 = vadd.f32 %v307_v38, %v289_v44  ;;  %v283_v61 = vmul.f32 %v1016_v36, %v274_v49  ;;  %v301_v63 = vld [vmem:[#allocation2 + $0x41] sm:$0xff]  ;;  %v258_v10 = vmul.f32 %v1014_v35, %v249_v54 }
  0xf5   : > { %v333_v60 = vmul.f32 1.442695, %v322_v51  ;;  %v309_v62 = vmul.f32 %v1022_v46, %v300_v53  ;;  %v316_v7 = vadd.f32 %v308_v52, %v290_v57  ;;  %v284_v16 = vmul.f32 %v1016_v36, %v275_v59 }
  0xf6   : > { %641 = vpow2.f32 %v329_v50  ;;  %v323_v3 = vsub.f32 0.0, %v315_v56  ;;  %v291_v11 = vadd.f32 %v283_v61, %v257_v58  ;;  %v310_v17 = vmul.f32 %v1022_v46, %v301_v63 }
  0xf7   : > { %643 = vpow2.f32 %v331_v55  ;;  %v324_v23 = vsub.f32 0.0, %v316_v7  ;;  %v292_v25 = vadd.f32 %v284_v16, %v258_v10 }
  0xf8   : > { %645 = vpow2.f32 %v333_v60  ;;  %v335_v22 = vmul.f32 1.442695, %v323_v3  ;;  %v317_v24 = vadd.f32 %v309_v62, %v291_v11 }
  0xf9   : > { %v337_v27 = vmul.f32 1.442695, %v324_v23  ;;  %v318_v29 = vadd.f32 %v310_v17, %v292_v25 }
  0xfa   : > { %647 = vpow2.f32 %v335_v22  ;;  %v325_v28 = vsub.f32 0.0, %v317_v24 }
  0xfb   : > { %v326_v36 = vsub.f32 0.0, %v318_v29 }
  0xfc   : > { %v640_v26 = vpop.eup %639  ;;  %v339_v33 = vmul.f32 1.442695, %v325_v28 }
  0xfd   : > { %v343_v30 = vadd.f32 1.0, %v640_v26  ;;  %v341_v37 = vmul.f32 1.442695, %v326_v36 }
  0xff   : > { %649 = vrcp.f32 %v343_v30 }
 0x100   : > { %v642_v31 = vpop.eup %641  ;;  %651 = vpow2.f32 %v337_v27 }
 0x101   : > { %v644_v32 = vpop.eup %643  ;;  %v344_v35 = vadd.f32 1.0, %v642_v31 }
 0x102   : > { %v646_v34 = vpop.eup %645  ;;  %v345_v46 = vadd.f32 1.0, %v644_v32 }
 0x103   : > { %653 = vrcp.f32 %v344_v35  ;;  %v346_v38 = vadd.f32 1.0, %v646_v34 }
 0x104   : > { %655 = vpow2.f32 %v339_v33  ;;  %v648_v39 = vpop.eup %647 }
 0x105   : > { %657 = vrcp.f32 %v345_v46  ;;  %v347_v41 = vadd.f32 1.0, %v648_v39 }
 0x106   : > { %659 = vpow2.f32 %v341_v37 }
 0x107   : > { %661 = vrcp.f32 %v346_v38 }
 0x108   : > { %663 = vrcp.f32 %v347_v41 }
 0x109   : > { %v650_v40 = vpop.eup %649 }
 0x10a   : > { %v652_v42 = vpop.eup %651  ;;  %385 = vperm.xlu0 %637, %v650_v40  }
 0x10b   : > { %v348_v44 = vadd.f32 1.0, %v652_v42 }
 0x10d   : > { %v654_v43 = vpop.eup %653  ;;  %665 = vrcp.f32 %v348_v44 }
 0x10e   : > { %390 = vperm.xlu1 %638, %v654_v43   ;;  %v656_v45 = vpop.eup %655 }
 0x10f   : > { %v658_v47 = vpop.eup %657  ;;  %v349_v48 = vadd.f32 1.0, %v656_v45 }
 0x110   : > { %v660_v49 = vpop.eup %659 }
 0x111   : > { %v662_v50 = vpop.eup %661  ;;  %667 = vrcp.f32 %v349_v48  ;;  %v350_v51 = vadd.f32 1.0, %v660_v49 }
 0x112   : > { %395 = vperm.xlu1 %638, %v658_v47   ;;  %v664_v52 = vpop.eup %663 }
 0x113   : > { %669 = vrcp.f32 %v350_v51 }
 0x116   : > { %400 = vperm.xlu1 %638, %v662_v50  }
 0x117   : > { %v666_v53 = vpop.eup %665 }
 0x11a   : > { %405 = vperm.xlu1 %638, %v664_v52  }
 0x11b   : > { %v668_v54 = vpop.eup %667 }
 0x11d   : > { %v670_v55 = vpop.eup %669 }
 0x11e   : > { %410 = vperm.xlu1 %638, %v666_v53  }
 0x122   : > { %415 = vperm.xlu1 %638, %v668_v54  }
 0x126   : > { %420 = vperm.xlu1 %638, %v670_v55  }
 0x189   : > { %v386_v56 = vpop.permute.xlu0 %385 }
 0x18a   : > { %v423_v57 = vmul.f32 %v386_v56, %v952_v0  ;;  %v424_v58 = vmul.f32 %v386_v56, %v954_v1 }
 0x18c   : > { %439 = vst [vmem:[%s1052_s29] sm:$0xff] %v423_v57  ;;  %440 = vst [vmem:[%s1052_s29 + $0x8] sm:$0xff] %v424_v58 }
 0x18d   : > { %v391_v59 = vpop.permute.xlu1 %390 }
 0x18e   : > { %v425_v60 = vmul.f32 %v391_v59, %v962_v5  ;;  %v426_v0 = vmul.f32 %v391_v59, %v964_v6 }
 0x190   : > { %441 = vst [vmem:[%s1052_s29 + $0x10] sm:$0xff] %v425_v60  ;;  %442 = vst [vmem:[%s1052_s29 + $0x18] sm:$0xff] %v426_v0 }
 0x191   : > { %v396_v1 = vpop.permute.xlu1 %395 }
 0x192   : > { %v427_v61 = vmul.f32 %v396_v1, %v956_v2  ;;  %v428_v62 = vmul.f32 %v396_v1, %v960_v4 }
 0x194   : > { %443 = vst [vmem:[%s1052_s29 + $0x20] sm:$0xff] %v427_v61  ;;  %444 = vst [vmem:[%s1052_s29 + $0x28] sm:$0xff] %v428_v62 }
 0x195   : > { %v401_v63 = vpop.permute.xlu1 %400 }
 0x196   : > { %v429_v3 = vmul.f32 %v401_v63, %v968_v8  ;;  %v430_v5 = vmul.f32 %v401_v63, %v970_v9 }
 0x198   : > { %445 = vst [vmem:[%s1052_s29 + $0x30] sm:$0xff] %v429_v3  ;;  %446 = vst [vmem:[%s1052_s29 + $0x38] sm:$0xff] %v430_v5 }
 0x199   : > { %v406_v6 = vpop.permute.xlu1 %405 }
 0x19a   : > { %v431_v2 = vmul.f32 %v406_v6, %v976_v12  ;;  %v432_v4 = vmul.f32 %v406_v6, %v978_v13 }
 0x19c   : > { %447 = vst [vmem:[%s1052_s29 + $0x40] sm:$0xff] %v431_v2  ;;  %448 = vst [vmem:[%s1052_s29 + $0x48] sm:$0xff] %v432_v4 }
 0x19d   : > { %v411_v7 = vpop.permute.xlu1 %410 }
 0x19e   : > { %v433_v10 = vmul.f32 %v411_v7, %v980_v14  ;;  %v434_v8 = vmul.f32 %v411_v7, %v982_v15 }
 0x1a0   : > { %449 = vst [vmem:[%s1052_s29 + $0x50] sm:$0xff] %v433_v10  ;;  %450 = vst [vmem:[%s1052_s29 + $0x58] sm:$0xff] %v434_v8 }
 0x1a1   : > { %v416_v9 = vpop.permute.xlu1 %415 }
 0x1a2   : > { %v435_v11 = vmul.f32 %v416_v9, %v988_v18  ;;  %v436_v12 = vmul.f32 %v416_v9, %v990_v19 }
 0x1a4   : > { %451 = vst [vmem:[%s1052_s29 + $0x60] sm:$0xff] %v435_v11  ;;  %452 = vst [vmem:[%s1052_s29 + $0x68] sm:$0xff] %v436_v12 }
 0x1a5   : > { %v421_v13 = vpop.permute.xlu1 %420 }
 0x1a6   : > { %v437_v14 = vmul.f32 %v421_v13, %v992_v20  ;;  %v438_v15 = vmul.f32 %v421_v13, %v994_v21 }
 0x1a8   : > { %453 = vst [vmem:[%s1052_s29 + $0x70] sm:$0xff] %v437_v14  ;;  %454 = vst [vmem:[%s1052_s29 + $0x78] sm:$0xff] %v438_v15 }
 0x1a9   : > { %727 = shalt.err (!%p724_p0)
}
 0x1aa   : > { %s728_s16 = scalar_lea.hbm %s1085_s7, 2048  ;;  %s732_s25 = scalar_lea.hbm %s1137_s2, 4096 }
 0x1ab   : > { %p729_p8 = scmp.ne.s32.totalorder %s1085_s7, %s728_s16  ;;  %p733_p1 = scmp.lt.u32.totalorder %s1085_s7, %s1137_s2 }
 0x1ac   : > { %p734_p2 = scmp.lt.u32.totalorder %s732_s25, %s728_s16  ;;  %p736_p12 = scmp.lt.u32.totalorder %s728_s16, %s1085_s7 }
 0x1ad   : > { %p730_p9 = pnand %p729_p8, %p1151_p13 }
 0x1ae   : > { %p735_p11 = por %p734_p2, %p733_p1 }
 0x1af   : > { %p731_p10 = pneg %p730_p9 }
 0x1b0   : > { %p737_p7 = por %p736_p12, %p735_p11 }
 0x1b2   : > { %p738_p3 = pnand %p737_p7, %p731_p10 }
 0x1b4   : > { %741 = shalt.err (!%p738_p3)
}
 0x1b5   : > { %s793_s23 = smov 256   ;;  %s794_s19 = smov 16  }
 0x1b6   : > { %580 = dma.vmem_to_hbm [thread:$0]  (%p1151_p13), %s1087_s4, 2048, %s1085_s7, %s456_s13, %s793_s23, %s793_s23, %s794_s19  }
 0x1b7 PF: > { %s484_s29 = sand.u32 1, %s772_s9   ;;  %p1152_p6 = scmp.ne.s32.totalorder %s1144_s22, 0 }
 0x1b8   : > { %p1153_p4 = scmp.ge.s32.totalorder %s784_s12, 2  ;;  %s485_s30 = scalar_lea.sflag [#allocation5], %s484_s29 }
 0x1ba   : > { %p591_p5 = pnand %p1153_p4, %p1152_p6 }
 0x1bc   : > { %767 = dma.done.wait (!%p591_p5), %s485_s30, 2048  }
 0x1bd   : > { %769 = vsyncadd (!%p591_p5), %s485_s30, 4294965248  ;;  %p16_p0 = scmp.ge.s32.totalorder %s835_s15, 4   ;;  %s1154_s9 = smov %s776_s10 }
 0x1be   : > { %s1155_s10 = smov %s780_s11  ;;  %s1156_s11 = smov %s847_s18 }
 0x1bf   : > { %s1157_s12 = smov %s835_s15  ;;  %18 = sbr.rel (!%p16_p0) target bundleno = 6 (0x6), region = 78 }
 0x1c6   :  { %490 = vsyncpa [#allocation4], 1 }
 0x1c7   :  { %492 = vsyncpa [#allocation4 + $0x1], 1 }
 0x1c8   :  { %493 = vsyncpa [#allocation5], 1 }
 0x1c9   :  { %495 = vsyncpa [#allocation5 + $0x1], 1 }
 0x1ca   :  { %496 = vsyncpa [#allocation6], 1 }
 0x1cb   :  { %498 = vsyncpa [#allocation6 + $0x1], 1 }

</bundles_post_ra>
